<compile_context>
chip_gen: v6e
topology: v6e:2x2x1
jax: 0.10.0
libtpu: 0.0.40
codegen_flags: <defaults>
</compile_context>

<pallas_src>
import functools
import re

import jax
import jax.numpy as jnp
from jax.experimental import pallas as pl
from jax.experimental.pallas import tpu as pltpu

KERNEL_SIZE = 9
PAD = (KERNEL_SIZE - 1) // 2       # 4
HALO = 8                           # sublane-aligned halo (>= PAD, multiple of 8)
LN_EPS = 1e-5
BN_EPS = 1e-5


def _round_up(n, m):
    return (n + m - 1) // m * m


def _tpu_generation():
    try:
        kind = jax.devices()[0].device_kind.lower()
        m = re.search(r"v(\d+)", kind)
        return int(m.group(1)) if m else 0
    except Exception:
        return 0


def conformer_conv_kernel(xp_ref, xc_ref, xn_ref, w1_ref, b1_ref, w_dw_ref,
                          b_dw_ref, w2_ref, b2_ref, o_ref, *,
                          t_real, d_real, t_tile, use_bf16_act):
    ti = pl.program_id(1)

    # Assemble the haloed window: [prev 8 rows | center t_tile rows | next 8 rows].
    # Window row w corresponds to original time index ti*t_tile - HALO + w.
    x = jnp.concatenate([xp_ref[0], xc_ref[0], xn_ref[0]], axis=0)   # (W, Dp) f32
    W, Dp = x.shape
    inv_d = 1.0 / d_real

    # 1. LayerNorm over the REAL channel count (gamma/beta folded into w1/b1 on
    #    the host). Centered sum-of-squares with an analytic correction for the
    #    (Dp - D) zero-padded lanes (two-pass accuracy at one-pass cost).
    mean = jnp.sum(x, axis=-1, keepdims=True) * inv_d
    xc = x - mean
    s2 = jnp.sum(xc * xc, axis=-1, keepdims=True)
    var = jnp.maximum((s2 - (Dp - d_real) * mean * mean) * inv_d, 0.0)
    x_norm = xc * jax.lax.rsqrt(var + LN_EPS)

    # 2. Fused pointwise Conv1d (D -> 2D): one bf16 MXU matmul, f32 accumulation,
    #    GLU split at the lane-aligned Dp boundary. Gate sigmoid in bf16 on
    #    v6e/v7x only (bf16 EUP), f32 on v5e.
    y = jnp.dot(x_norm.astype(jnp.bfloat16), w1_ref[...],
                preferred_element_type=jnp.float32) + b1_ref[...]
    y_val = y[:, :Dp]
    y_gate = y[:, Dp:]
    if use_bf16_act:
        gate = jax.nn.sigmoid(y_gate.astype(jnp.bfloat16)).astype(jnp.float32)
    else:
        gate = jax.nn.sigmoid(y_gate)
    glu = y_val * gate

    # Zero rows outside the real sequence ONCE (single (W,1) mask). After this,
    # the 9-tap loop needs no per-tap masking: the halo guarantees no roll
    # wrap-around for the t_tile rows that are stored.
    row = jax.lax.broadcasted_iota(jnp.int32, (W, 1), 0)
    orig = ti * t_tile - HALO + row
    glu = jnp.where((orig >= 0) & (orig < t_real), glu, 0.0)

    # 3. Depthwise Conv1d (k=9, zero 'same' padding) with eval-BatchNorm folded
    #    into w_dw/b_dw. Center tap seeds the accumulator; the 8 remaining taps
    #    are roll (XLU slot) + mul + add only.
    w_dw = w_dw_ref[...]                             # (K, Dp), read once
    acc = glu * w_dw[PAD]
    for k in range(KERNEL_SIZE):                     # static unroll
        if k == PAD:
            continue
        acc = acc + pltpu.roll(glu, shift=(PAD - k) % W, axis=0) * w_dw[k]
    dw = acc[HALO:HALO + t_tile] + b_dw_ref[...]     # 8-aligned slice -> (t_tile, Dp)

    # 4. Swish (bf16 sigmoid on v6e/v7x only).
    if use_bf16_act:
        sw = dw * jax.nn.sigmoid(dw.astype(jnp.bfloat16)).astype(jnp.float32)
    else:
        sw = dw * jax.nn.sigmoid(dw)

    # 5. Pointwise Conv1d (D -> D), bf16 MXU matmul with f32 accumulation.
    out = jnp.dot(sw.astype(jnp.bfloat16), w2_ref[...],
                  preferred_element_type=jnp.float32) + b2_ref[...]

    # 6. Dropout: identity at inference.
    # TODO(synk): training-mode dropout / batch-stat BatchNorm not implemented
    #             (eval semantics; BN folded on the host).
    o_ref[0] = out.astype(o_ref.dtype)               # full-block, lane/sublane dense


def _prepare_params(params, d_real, d_pad):
    """Fold LN affine into pointwise-1 and eval-BN into the depthwise conv,
    pad channels to d_pad (lane-dense) and cast MXU weights to bf16."""
    (ln_g, ln_b, w1, b1, w_dw, b_dw, bn_g, bn_b, bn_rm, bn_rv, w2, b2) = params
    D = d_real

    # (x_norm*g + b) @ W + c  ==  x_norm @ (g[:,None]*W) + (b @ W + c)
    w1f = ln_g[:, None] * w1                       # (D, 2D)
    b1f = b1 + ln_b @ w1                           # (2D,)

    bn_scale = bn_g / jnp.sqrt(bn_rv + BN_EPS)     # (D,)
    w_dwf = w_dw * bn_scale[None, :]               # (K, D)
    b_dwf = (b_dw - bn_rm) * bn_scale + bn_b       # (D,)

    w1_p = jnp.zeros((d_pad, 2 * d_pad), jnp.float32)
    w1_p = w1_p.at[:D, :D].set(w1f[:, :D])                      # GLU value half
    w1_p = w1_p.at[:D, d_pad:d_pad + D].set(w1f[:, D:])         # GLU gate half
    b1_p = jnp.zeros((1, 2 * d_pad), jnp.float32)
    b1_p = b1_p.at[0, :D].set(b1f[:D])
    b1_p = b1_p.at[0, d_pad:d_pad + D].set(b1f[D:])
    w_dw_p = jnp.zeros((KERNEL_SIZE, d_pad), jnp.float32).at[:, :D].set(w_dwf)
    b_dw_p = jnp.zeros((1, d_pad), jnp.float32).at[0, :D].set(b_dwf)
    w2_p = jnp.zeros((d_pad, d_pad), jnp.float32).at[:D, :D].set(w2)
    b2_p = jnp.zeros((1, d_pad), jnp.float32).at[0, :D].set(b2)

    return (w1_p.astype(jnp.bfloat16), b1_p, w_dw_p, b_dw_p,
            w2_p.astype(jnp.bfloat16), b2_p)


def _vmem_limit_bytes(t_tile, d_pad):
    f32, bf16 = 4, 2
    t_win = t_tile + 2 * HALO
    # double-buffered activation blocks (window pieces in, tile out)
    io = 2 * ((t_win + t_tile) * d_pad) * f32
    # single-buffered constant weights (pl.Buffered(1)) + small f32 params
    wts = (d_pad * 2 * d_pad + d_pad * d_pad) * bf16
    wts += (KERNEL_SIZE + 5) * d_pad * f32
    # live temporaries in the body (x window, x_norm, y(2Dp), glu, acc, ...)
    tmp = (8 * t_win * d_pad + 2 * t_win * 2 * d_pad) * f32
    need = int(1.3 * (io + wts + tmp)) + (2 << 20)
    try:
        cap = int(pltpu.get_tpu_info().vmem_capacity_bytes)
    except Exception:
        cap = 64 << 20                             # be conservative (v7x per-TC)
    # never request the whole physical VMEM (leave compiler scratch headroom)
    return max(32 << 20, min(need, int(0.75 * cap)))


def fast_conformer_conv_module(x, params):
    """x: (B, T, D) float32 -> (B, T, D) float32."""
    B, T, D = x.shape
    gen = _tpu_generation()
    use_bf16_act = gen >= 6                    # bf16 EUP path exists on v6e/v7x only

    # Lane-dense channels; prefer a 256 multiple on v6e/v7x when nearly free.
    d_pad = _round_up(D, 128)
    if gen >= 6 and d_pad % 256 != 0:
        d256 = _round_up(D, 256)
        if d256 - d_pad <= d_pad // 3:
            d_pad = d256

    # T tiling: ~256-row tiles (multiple of 8), balanced so padding stays small.
    t_base = 256 if d_pad <= 1024 else 128
    if T <= t_base:
        n_tiles = 1
        t_tile = _round_up(T, 8)
    else:
        n_tiles = -(-T // t_base)
        t_tile = _round_up(-(-T // n_tiles), 8)
    t_pad = n_tiles * t_tile

    w1, b1, w_dw, b_dw, w2, b2 = _prepare_params(params, D, d_pad)

    if (t_pad, d_pad) != (T, D):
        # TODO(synk): when D is already a multiple of 128 the ragged last T tile
        #             could be handled by the in-kernel row mask alone, avoiding
        #             this extra HBM read+write of the activations.
        x_in = jnp.zeros((B, t_pad, d_pad), x.dtype).at[:, :T, :D].set(x)
    else:
        x_in = x

    kernel = functools.partial(conformer_conv_kernel, t_real=T, d_real=D,
                               t_tile=t_tile, use_bf16_act=use_bf16_act)

    tb8 = t_tile // 8
    nb8 = t_pad // 8

    def prev_map(b, ti):                      # last 8 rows of the previous tile
        return (b, jnp.maximum(ti * tb8 - 1, 0), 0)

    def center_map(b, ti):
        return (b, ti, 0)

    def next_map(b, ti):                      # first 8 rows of the next tile
        return (b, jnp.minimum((ti + 1) * tb8, nb8 - 1), 0)

    def const2(b, ti):
        return (0, 0)

    def wspec(shape):                         # constant blocks: single-buffered
        return pl.BlockSpec(shape, const2, pipeline_mode=pl.Buffered(1))

    grid_spec = pltpu.PrefetchScalarGridSpec(
        num_scalar_prefetch=0,
        grid=(B, n_tiles),
        in_specs=[
            pl.BlockSpec((1, HALO, d_pad), prev_map),      # left halo (masked at edges)
            pl.BlockSpec((1, t_tile, d_pad), center_map),  # center tile
            pl.BlockSpec((1, HALO, d_pad), next_map),      # right halo (masked at edges)
            wspec((d_pad, 2 * d_pad)),                     # fused pw1 weight (bf16, LN folded)
            wspec((1, 2 * d_pad)),                         # fused pw1 bias
            wspec((KERNEL_SIZE, d_pad)),                   # depthwise weight (BN folded)
            wspec((1, d_pad)),                             # depthwise bias (BN folded)
            wspec((d_pad, d_pad)),                         # pw2 weight (bf16)
            wspec((1, d_pad)),                             # pw2 bias
        ],
        out_specs=pl.BlockSpec((1, t_tile, d_pad), center_map),
    )
    out = pl.pallas_call(
        kernel,
        out_shape=jax.ShapeDtypeStruct((B, t_pad, d_pad), x.dtype),
        grid_spec=grid_spec,
        compiler_params=pltpu.CompilerParams(
            dimension_semantics=("parallel", "parallel"),
            vmem_limit_bytes=_vmem_limit_bytes(t_tile, d_pad),
        ),
    )(x_in, x_in, x_in, w1, b1, w_dw, b_dw, w2, b2)
    return out[:, :T, :D]


def init_params(key, D):
    """Deterministic synthetic parameters. Shapes mirror the PyTorch module after
    squeezing the Conv1d kernel dim; real Conv1d weights (out, in, 1) must be
    transposed to (in, out) before use here."""
    ks = jax.random.split(key, 12)
    ln_g = 1.0 + 0.1 * jax.random.normal(ks[0], (D,), jnp.float32)
    ln_b = 0.1 * jax.random.normal(ks[1], (D,), jnp.float32)
    # PointwiseConv1d(D -> 2D): PyTorch weight (2D, D, 1) -> (in=D, out=2D).
    w1 = jax.random.normal(ks[2], (D, 2 * D), jnp.float32) * 0.1
    b1 = jax.random.normal(ks[3], (2 * D,), jnp.float32) * 0.05
    # DepthwiseConv1d: PyTorch weight (D, 1, 9) -> stored (9, D).
    w_dw = jax.random.normal(ks[4], (KERNEL_SIZE, D), jnp.float32) * 0.1
    b_dw = jax.random.normal(ks[5], (D,), jnp.float32) * 0.05
    # BatchNorm1d affine + running stats (eval semantics).
    bn_g = 1.0 + 0.1 * jax.random.normal(ks[6], (D,), jnp.float32)
    bn_b = 0.1 * jax.random.normal(ks[7], (D,), jnp.float32)
    bn_rm = 0.1 * jax.random.normal(ks[8], (D,), jnp.float32)
    bn_rv = jax.random.uniform(ks[9], (D,), jnp.float32, 0.5, 1.5)
    # Final PointwiseConv1d(D -> D): PyTorch weight (D, D, 1) -> (in=D, out=D).
    w2 = jax.random.normal(ks[10], (D, D), jnp.float32) * 0.1
    b2 = jax.random.normal(ks[11], (D,), jnp.float32) * 0.05
    return (ln_g, ln_b, w1, b1, w_dw, b_dw, bn_g, bn_b, bn_rm, bn_rv, w2, b2)


def reference_forward(x, params):
    """Pure-JAX reference of the module forward (eval semantics)."""
    (ln_g, ln_b, w1, b1, w_dw, b_dw, bn_g, bn_b, bn_rm, bn_rv, w2, b2) = params
    B, T, D = x.shape
    mean = jnp.mean(x, axis=-1, keepdims=True)
    var = jnp.mean((x - mean) ** 2, axis=-1, keepdims=True)
    x_ln = (x - mean) / jnp.sqrt(var + LN_EPS) * ln_g + ln_b
    y = x_ln @ w1 + b1
    glu = y[..., :D] * jax.nn.sigmoid(y[..., D:])
    xp = jnp.pad(glu, ((0, 0), (PAD, PAD), (0, 0)))
    dw = sum(xp[:, k:k + T, :] * w_dw[k] for k in range(KERNEL_SIZE)) + b_dw
    bn = (dw - bn_rm) / jnp.sqrt(bn_rv + BN_EPS) * bn_g + bn_b
    sw = bn * jax.nn.sigmoid(bn)
    return sw @ w2 + b2


if __name__ == "__main__":
    B, T, D = 2, 16, 32
    key = jax.random.PRNGKey(0)
    kx, kp = jax.random.split(key)
    x = jax.random.normal(kx, (B, T, D), jnp.float32)
    params = init_params(kp, D)

    out = fast_conformer_conv_module(x, params)
    out = jax.block_until_ready(out)
    assert out.shape == (B, T, D) and out.dtype == jnp.float32

    ref = reference_forward(x, params)
    assert jnp.allclose(out, ref, atol=2e-2, rtol=2e-2), \
        float(jnp.max(jnp.abs(out - ref)))
    print("KERNEL_OK")
</pallas_src>

<mosaic_0001>
module attributes {stable_mosaic.version = 11 : i64} {
  func.func @conformer_conv_kernel(%arg0: i32, %arg1: i32, %arg2: memref<1x8x128xf32, #tpu.memory_space<vmem>>, %arg3: memref<1x16x128xf32, #tpu.memory_space<vmem>>, %arg4: memref<1x8x128xf32, #tpu.memory_space<vmem>>, %arg5: memref<128x256xbf16, #tpu.memory_space<vmem>>, %arg6: memref<1x256xf32, #tpu.memory_space<vmem>>, %arg7: memref<9x128xf32, #tpu.memory_space<vmem>>, %arg8: memref<1x128xf32, #tpu.memory_space<vmem>>, %arg9: memref<128x128xbf16, #tpu.memory_space<vmem>>, %arg10: memref<1x128xf32, #tpu.memory_space<vmem>>, %arg11: memref<1x16x128xf32, #tpu.memory_space<vmem>>) attributes {dimension_semantics = [#tpu.dimension_semantics<parallel>, #tpu.dimension_semantics<parallel>], iteration_bounds = array<i64: 2, 1>, scalar_prefetch = 0 : i64, scratch_operands = 0 : i64, tpu.core_type = #tpu.core_type<tc>, window_params = [{transform_indices = @transform_0, window_bounds = array<i64: 1, 8, 128>}, {transform_indices = @transform_1, window_bounds = array<i64: 1, 16, 128>}, {transform_indices = @transform_2, window_bounds = array<i64: 1, 8, 128>}, {pipeline_mode = #tpu.pipeline_mode<synchronous>, transform_indices = @transform_3, window_bounds = array<i64: 128, 256>}, {pipeline_mode = #tpu.pipeline_mode<synchronous>, transform_indices = @transform_4, window_bounds = array<i64: 1, 256>}, {pipeline_mode = #tpu.pipeline_mode<synchronous>, transform_indices = @transform_5, window_bounds = array<i64: 9, 128>}, {pipeline_mode = #tpu.pipeline_mode<synchronous>, transform_indices = @transform_6, window_bounds = array<i64: 1, 128>}, {pipeline_mode = #tpu.pipeline_mode<synchronous>, transform_indices = @transform_7, window_bounds = array<i64: 128, 128>}, {pipeline_mode = #tpu.pipeline_mode<synchronous>, transform_indices = @transform_8, window_bounds = array<i64: 1, 128>}, {transform_indices = @transform_9, window_bounds = array<i64: 1, 16, 128>}]} {
    %c0 = arith.constant 0 : index
    %c0_0 = arith.constant 0 : index
    %c0_1 = arith.constant 0 : index
    %0 = vector.load %arg2[%c0, %c0_0, %c0_1] : memref<1x8x128xf32, #tpu.memory_space<vmem>>, vector<1x8x128xf32>
    %1 = vector.shape_cast %0 : vector<1x8x128xf32> to vector<8x128xf32>
    %c0_2 = arith.constant 0 : index
    %c0_3 = arith.constant 0 : index
    %c0_4 = arith.constant 0 : index
    %2 = vector.load %arg3[%c0_2, %c0_3, %c0_4] : memref<1x16x128xf32, #tpu.memory_space<vmem>>, vector<1x16x128xf32>
    %3 = vector.shape_cast %2 : vector<1x16x128xf32> to vector<16x128xf32>
    %c0_5 = arith.constant 0 : index
    %c0_6 = arith.constant 0 : index
    %c0_7 = arith.constant 0 : index
    %4 = vector.load %arg4[%c0_5, %c0_6, %c0_7] : memref<1x8x128xf32, #tpu.memory_space<vmem>>, vector<1x8x128xf32>
    %5 = vector.shape_cast %4 : vector<1x8x128xf32> to vector<8x128xf32>
    %6 = tpu.concatenate %1, %3, %5 in 0 : vector<8x128xf32>, vector<16x128xf32>, vector<8x128xf32> -> vector<32x128xf32>
    %cst = arith.constant dense<0.000000e+00> : vector<32xf32>
    %7 = vector.multi_reduction <add>, %6, %cst [1] : vector<32x128xf32> to vector<32xf32>
    %8 = vector.shape_cast %7 : vector<32xf32> to vector<32x1xf32>
    %cst_8 = arith.constant 3.125000e-02 : f32
    %9 = vector.broadcast %cst_8 : f32 to vector<32x1xf32>
    %10 = arith.mulf %8, %9 : vector<32x1xf32>
    %11 = vector.broadcast %10 : vector<32x1xf32> to vector<32x128xf32>
    %12 = arith.subf %6, %11 : vector<32x128xf32>
    %13 = arith.mulf %12, %12 : vector<32x128xf32>
    %cst_9 = arith.constant dense<0.000000e+00> : vector<32xf32>
    %14 = vector.multi_reduction <add>, %13, %cst_9 [1] : vector<32x128xf32> to vector<32xf32>
    %15 = vector.shape_cast %14 : vector<32xf32> to vector<32x1xf32>
    %cst_10 = arith.constant 9.600000e+01 : f32
    %16 = vector.broadcast %cst_10 : f32 to vector<32x1xf32>
    %17 = arith.mulf %16, %10 : vector<32x1xf32>
    %18 = arith.mulf %17, %10 : vector<32x1xf32>
    %19 = arith.subf %15, %18 : vector<32x1xf32>
    %cst_11 = arith.constant 3.125000e-02 : f32
    %20 = vector.broadcast %cst_11 : f32 to vector<32x1xf32>
    %21 = arith.mulf %19, %20 : vector<32x1xf32>
    %cst_12 = arith.constant 0.000000e+00 : f32
    %22 = vector.broadcast %cst_12 : f32 to vector<32x1xf32>
    %23 = arith.maximumf %21, %22 : vector<32x1xf32>
    %cst_13 = arith.constant 9.99999974E-6 : f32
    %24 = vector.broadcast %cst_13 : f32 to vector<32x1xf32>
    %25 = arith.addf %23, %24 : vector<32x1xf32>
    %26 = math.rsqrt %25 : vector<32x1xf32>
    %27 = vector.broadcast %26 : vector<32x1xf32> to vector<32x128xf32>
    %28 = arith.mulf %12, %27 : vector<32x128xf32>
    %29 = arith.truncf %28 : vector<32x128xf32> to vector<32x128xbf16>
    %c0_14 = arith.constant 0 : index
    %c0_15 = arith.constant 0 : index
    %30 = vector.load %arg5[%c0_14, %c0_15] : memref<128x256xbf16, #tpu.memory_space<vmem>>, vector<128x256xbf16>
    %cst_16 = arith.constant dense<0.000000e+00> : vector<32x256xf32>
    %31 = tpu.matmul %29, %30, %cst_16 {dimension_numbers = #tpu.dot_dimension_numbers<[1], [0], [0], [1], [0, 0, 1, 1], [], []>} : vector<32x128xbf16>, vector<128x256xbf16>, vector<32x256xf32> -> vector<32x256xf32>
    %c0_17 = arith.constant 0 : index
    %c0_18 = arith.constant 0 : index
    %32 = vector.load %arg6[%c0_17, %c0_18] : memref<1x256xf32, #tpu.memory_space<vmem>>, vector<1x256xf32>
    %33 = vector.broadcast %32 : vector<1x256xf32> to vector<32x256xf32>
    %34 = arith.addf %31, %33 : vector<32x256xf32>
    %35 = vector.extract_strided_slice %34 {offsets = [0, 0], sizes = [32, 128], strides = [1, 1]} : vector<32x256xf32> to vector<32x128xf32>
    %36 = vector.extract_strided_slice %34 {offsets = [0, 128], sizes = [32, 128], strides = [1, 1]} : vector<32x256xf32> to vector<32x128xf32>
    %37 = arith.negf %36 : vector<32x128xf32>
    %38 = math.exp %37 : vector<32x128xf32>
    %cst_19 = arith.constant 1.000000e+00 : f32
    %39 = vector.broadcast %cst_19 : f32 to vector<32x128xf32>
    %40 = arith.addf %39, %38 : vector<32x128xf32>
    %41 = arith.divf %39, %40 : vector<32x128xf32>
    %42 = arith.mulf %35, %41 : vector<32x128xf32>
    %43 = tpu.iota {dimensions = array<i32: 0>} : vector<32x1xi32>
    %c16_i32 = arith.constant 16 : i32
    %44 = arith.muli %arg1, %c16_i32 : i32
    %c8_i32 = arith.constant 8 : i32
    %45 = arith.subi %44, %c8_i32 : i32
    %46 = vector.broadcast %45 : i32 to vector<32x1xi32>
    %47 = arith.addi %46, %43 : vector<32x1xi32>
    %c0_i32 = arith.constant 0 : i32
    %48 = vector.broadcast %c0_i32 : i32 to vector<32x1xi32>
    %49 = arith.cmpi sge, %47, %48 : vector<32x1xi32>
    %c16_i32_20 = arith.constant 16 : i32
    %50 = vector.broadcast %c16_i32_20 : i32 to vector<32x1xi32>
    %51 = arith.cmpi slt, %47, %50 : vector<32x1xi32>
    %52 = arith.andi %49, %51 : vector<32x1xi1>
    %cst_21 = arith.constant 0.000000e+00 : f32
    %53 = vector.shape_cast %52 : vector<32x1xi1> to vector<32x1xi1>
    %54 = vector.broadcast %53 : vector<32x1xi1> to vector<32x128xi1>
    %55 = vector.broadcast %cst_21 : f32 to vector<32x128xf32>
    %56 = arith.select %54, %42, %55 : vector<32x128xi1>, vector<32x128xf32>
    %c0_22 = arith.constant 0 : index
    %c0_23 = arith.constant 0 : index
    %57 = vector.load %arg7[%c0_22, %c0_23] : memref<9x128xf32, #tpu.memory_space<vmem>>, vector<9x128xf32>
    %58 = vector.extract_strided_slice %57 {offsets = [4, 0], sizes = [1, 128], strides = [1, 1]} : vector<9x128xf32> to vector<1x128xf32>
    %59 = vector.shape_cast %58 : vector<1x128xf32> to vector<128xf32>
    %60 = vector.shape_cast %59 : vector<128xf32> to vector<1x128xf32>
    %61 = vector.broadcast %60 : vector<1x128xf32> to vector<32x128xf32>
    %62 = arith.mulf %56, %61 : vector<32x128xf32>
    %c4_i32 = arith.constant 4 : i32
    %63 = tpu.dynamic_rotate %56 by %c4_i32 dim 0 : vector<32x128xf32>, i32 -> vector<32x128xf32>
    %64 = vector.extract_strided_slice %57 {offsets = [0, 0], sizes = [1, 128], strides = [1, 1]} : vector<9x128xf32> to vector<1x128xf32>
    %65 = vector.shape_cast %64 : vector<1x128xf32> to vector<128xf32>
    %66 = vector.shape_cast %65 : vector<128xf32> to vector<1x128xf32>
    %67 = vector.broadcast %66 : vector<1x128xf32> to vector<32x128xf32>
    %68 = arith.mulf %63, %67 : vector<32x128xf32>
    %69 = arith.addf %62, %68 : vector<32x128xf32>
    %c3_i32 = arith.constant 3 : i32
    %70 = tpu.dynamic_rotate %56 by %c3_i32 dim 0 : vector<32x128xf32>, i32 -> vector<32x128xf32>
    %71 = vector.extract_strided_slice %57 {offsets = [1, 0], sizes = [1, 128], strides = [1, 1]} : vector<9x128xf32> to vector<1x128xf32>
    %72 = vector.shape_cast %71 : vector<1x128xf32> to vector<128xf32>
    %73 = vector.shape_cast %72 : vector<128xf32> to vector<1x128xf32>
    %74 = vector.broadcast %73 : vector<1x128xf32> to vector<32x128xf32>
    %75 = arith.mulf %70, %74 : vector<32x128xf32>
    %76 = arith.addf %69, %75 : vector<32x128xf32>
    %c2_i32 = arith.constant 2 : i32
    %77 = tpu.dynamic_rotate %56 by %c2_i32 dim 0 : vector<32x128xf32>, i32 -> vector<32x128xf32>
    %78 = vector.extract_strided_slice %57 {offsets = [2, 0], sizes = [1, 128], strides = [1, 1]} : vector<9x128xf32> to vector<1x128xf32>
    %79 = vector.shape_cast %78 : vector<1x128xf32> to vector<128xf32>
    %80 = vector.shape_cast %79 : vector<128xf32> to vector<1x128xf32>
    %81 = vector.broadcast %80 : vector<1x128xf32> to vector<32x128xf32>
    %82 = arith.mulf %77, %81 : vector<32x128xf32>
    %83 = arith.addf %76, %82 : vector<32x128xf32>
    %c1_i32 = arith.constant 1 : i32
    %84 = tpu.dynamic_rotate %56 by %c1_i32 dim 0 : vector<32x128xf32>, i32 -> vector<32x128xf32>
    %85 = vector.extract_strided_slice %57 {offsets = [3, 0], sizes = [1, 128], strides = [1, 1]} : vector<9x128xf32> to vector<1x128xf32>
    %86 = vector.shape_cast %85 : vector<1x128xf32> to vector<128xf32>
    %87 = vector.shape_cast %86 : vector<128xf32> to vector<1x128xf32>
    %88 = vector.broadcast %87 : vector<1x128xf32> to vector<32x128xf32>
    %89 = arith.mulf %84, %88 : vector<32x128xf32>
    %90 = arith.addf %83, %89 : vector<32x128xf32>
    %c31_i32 = arith.constant 31 : i32
    %91 = tpu.dynamic_rotate %56 by %c31_i32 dim 0 : vector<32x128xf32>, i32 -> vector<32x128xf32>
    %92 = vector.extract_strided_slice %57 {offsets = [5, 0], sizes = [1, 128], strides = [1, 1]} : vector<9x128xf32> to vector<1x128xf32>
    %93 = vector.shape_cast %92 : vector<1x128xf32> to vector<128xf32>
    %94 = vector.shape_cast %93 : vector<128xf32> to vector<1x128xf32>
    %95 = vector.broadcast %94 : vector<1x128xf32> to vector<32x128xf32>
    %96 = arith.mulf %91, %95 : vector<32x128xf32>
    %97 = arith.addf %90, %96 : vector<32x128xf32>
    %c30_i32 = arith.constant 30 : i32
    %98 = tpu.dynamic_rotate %56 by %c30_i32 dim 0 : vector<32x128xf32>, i32 -> vector<32x128xf32>
    %99 = vector.extract_strided_slice %57 {offsets = [6, 0], sizes = [1, 128], strides = [1, 1]} : vector<9x128xf32> to vector<1x128xf32>
    %100 = vector.shape_cast %99 : vector<1x128xf32> to vector<128xf32>
    %101 = vector.shape_cast %100 : vector<128xf32> to vector<1x128xf32>
    %102 = vector.broadcast %101 : vector<1x128xf32> to vector<32x128xf32>
    %103 = arith.mulf %98, %102 : vector<32x128xf32>
    %104 = arith.addf %97, %103 : vector<32x128xf32>
    %c29_i32 = arith.constant 29 : i32
    %105 = tpu.dynamic_rotate %56 by %c29_i32 dim 0 : vector<32x128xf32>, i32 -> vector<32x128xf32>
    %106 = vector.extract_strided_slice %57 {offsets = [7, 0], sizes = [1, 128], strides = [1, 1]} : vector<9x128xf32> to vector<1x128xf32>
    %107 = vector.shape_cast %106 : vector<1x128xf32> to vector<128xf32>
    %108 = vector.shape_cast %107 : vector<128xf32> to vector<1x128xf32>
    %109 = vector.broadcast %108 : vector<1x128xf32> to vector<32x128xf32>
    %110 = arith.mulf %105, %109 : vector<32x128xf32>
    %111 = arith.addf %104, %110 : vector<32x128xf32>
    %c28_i32 = arith.constant 28 : i32
    %112 = tpu.dynamic_rotate %56 by %c28_i32 dim 0 : vector<32x128xf32>, i32 -> vector<32x128xf32>
    %113 = vector.extract_strided_slice %57 {offsets = [8, 0], sizes = [1, 128], strides = [1, 1]} : vector<9x128xf32> to vector<1x128xf32>
    %114 = vector.shape_cast %113 : vector<1x128xf32> to vector<128xf32>
    %115 = vector.shape_cast %114 : vector<128xf32> to vector<1x128xf32>
    %116 = vector.broadcast %115 : vector<1x128xf32> to vector<32x128xf32>
    %117 = arith.mulf %112, %116 : vector<32x128xf32>
    %118 = arith.addf %111, %117 : vector<32x128xf32>
    %119 = vector.extract_strided_slice %118 {offsets = [8, 0], sizes = [16, 128], strides = [1, 1]} : vector<32x128xf32> to vector<16x128xf32>
    %c0_24 = arith.constant 0 : index
    %c0_25 = arith.constant 0 : index
    %120 = vector.load %arg8[%c0_24, %c0_25] : memref<1x128xf32, #tpu.memory_space<vmem>>, vector<1x128xf32>
    %121 = vector.broadcast %120 : vector<1x128xf32> to vector<16x128xf32>
    %122 = arith.addf %119, %121 : vector<16x128xf32>
    %123 = arith.negf %122 : vector<16x128xf32>
    %124 = math.exp %123 : vector<16x128xf32>
    %cst_26 = arith.constant 1.000000e+00 : f32
    %125 = vector.broadcast %cst_26 : f32 to vector<16x128xf32>
    %126 = arith.addf %125, %124 : vector<16x128xf32>
    %127 = arith.divf %125, %126 : vector<16x128xf32>
    %128 = arith.mulf %122, %127 : vector<16x128xf32>
    %129 = arith.truncf %128 : vector<16x128xf32> to vector<16x128xbf16>
    %c0_27 = arith.constant 0 : index
    %c0_28 = arith.constant 0 : index
    %130 = vector.load %arg9[%c0_27, %c0_28] : memref<128x128xbf16, #tpu.memory_space<vmem>>, vector<128x128xbf16>
    %cst_29 = arith.constant dense<0.000000e+00> : vector<16x128xf32>
    %131 = tpu.matmul %129, %130, %cst_29 {dimension_numbers = #tpu.dot_dimension_numbers<[1], [0], [0], [1], [0, 0, 1, 1], [], []>} : vector<16x128xbf16>, vector<128x128xbf16>, vector<16x128xf32> -> vector<16x128xf32>
    %c0_30 = arith.constant 0 : index
    %c0_31 = arith.constant 0 : index
    %132 = vector.load %arg10[%c0_30, %c0_31] : memref<1x128xf32, #tpu.memory_space<vmem>>, vector<1x128xf32>
    %133 = vector.broadcast %132 : vector<1x128xf32> to vector<16x128xf32>
    %134 = arith.addf %131, %133 : vector<16x128xf32>
    %c0_32 = arith.constant 0 : index
    %c0_33 = arith.constant 0 : index
    %c0_34 = arith.constant 0 : index
    %135 = vector.load %arg11[%c0_32, %c0_33, %c0_34] : memref<1x16x128xf32, #tpu.memory_space<vmem>>, vector<1x16x128xf32>
    %136 = vector.shape_cast %135 : vector<1x16x128xf32> to vector<16x128xf32>
    %137 = vector.shape_cast %134 : vector<16x128xf32> to vector<1x16x128xf32>
    tpu.vector_store %arg11[%c0_32, %c0_33, %c0_34], %137 {strides = array<i32>} : memref<1x16x128xf32, #tpu.memory_space<vmem>>, vector<1x16x128xf32>,
    return
  }
  func.func @transform_0(%arg0: i32, %arg1: i32) -> (i32, i32, i32) {
    %c2_i32 = arith.constant 2 : i32
    %0 = arith.muli %arg1, %c2_i32 : i32
    %c1_i32 = arith.constant 1 : i32
    %1 = arith.subi %0, %c1_i32 : i32
    %c0_i32 = arith.constant 0 : i32
    %2 = arith.maxsi %1, %c0_i32 : i32
    %c0_i32_0 = arith.constant 0 : i32
    %c0_i32_1 = arith.constant 0 : i32
    return %arg0, %2, %c0_i32_0 : i32, i32, i32
  }
  func.func @transform_1(%arg0: i32, %arg1: i32) -> (i32, i32, i32) {
    %c0_i32 = arith.constant 0 : i32
    %c0_i32_0 = arith.constant 0 : i32
    return %arg0, %arg1, %c0_i32 : i32, i32, i32
  }
  func.func @transform_2(%arg0: i32, %arg1: i32) -> (i32, i32, i32) {
    %c1_i32 = arith.constant 1 : i32
    %0 = arith.addi %arg1, %c1_i32 : i32
    %c2_i32 = arith.constant 2 : i32
    %1 = arith.muli %0, %c2_i32 : i32
    %c1_i32_0 = arith.constant 1 : i32
    %2 = arith.minsi %1, %c1_i32_0 : i32
    %c0_i32 = arith.constant 0 : i32
    %c0_i32_1 = arith.constant 0 : i32
    return %arg0, %2, %c0_i32 : i32, i32, i32
  }
  func.func @transform_3(%arg0: i32, %arg1: i32) -> (i32, i32) {
    %c0_i32 = arith.constant 0 : i32
    %c0_i32_0 = arith.constant 0 : i32
    %c0_i32_1 = arith.constant 0 : i32
    return %c0_i32, %c0_i32_0 : i32, i32
  }
  func.func @transform_4(%arg0: i32, %arg1: i32) -> (i32, i32) {
    %c0_i32 = arith.constant 0 : i32
    %c0_i32_0 = arith.constant 0 : i32
    %c0_i32_1 = arith.constant 0 : i32
    return %c0_i32, %c0_i32_0 : i32, i32
  }
  func.func @transform_5(%arg0: i32, %arg1: i32) -> (i32, i32) {
    %c0_i32 = arith.constant 0 : i32
    %c0_i32_0 = arith.constant 0 : i32
    %c0_i32_1 = arith.constant 0 : i32
    return %c0_i32, %c0_i32_0 : i32, i32
  }
  func.func @transform_6(%arg0: i32, %arg1: i32) -> (i32, i32) {
    %c0_i32 = arith.constant 0 : i32
    %c0_i32_0 = arith.constant 0 : i32
    %c0_i32_1 = arith.constant 0 : i32
    return %c0_i32, %c0_i32_0 : i32, i32
  }
  func.func @transform_7(%arg0: i32, %arg1: i32) -> (i32, i32) {
    %c0_i32 = arith.constant 0 : i32
    %c0_i32_0 = arith.constant 0 : i32
    %c0_i32_1 = arith.constant 0 : i32
    return %c0_i32, %c0_i32_0 : i32, i32
  }
  func.func @transform_8(%arg0: i32, %arg1: i32) -> (i32, i32) {
    %c0_i32 = arith.constant 0 : i32
    %c0_i32_0 = arith.constant 0 : i32
    %c0_i32_1 = arith.constant 0 : i32
    return %c0_i32, %c0_i32_0 : i32, i32
  }
  func.func @transform_9(%arg0: i32, %arg1: i32) -> (i32, i32, i32) {
    %c0_i32 = arith.constant 0 : i32
    %c0_i32_0 = arith.constant 0 : i32
    return %arg0, %arg1, %c0_i32 : i32, i32, i32
  }
}

</mosaic_0001>

<bundles_post_ra>
// kernel: tpu_custom_call.1
= control target key start
LH: loop header
LB: loop body
LE: loop exit
PB: predicated region body
PF: predicated region fallthrough
CT: control target
= control target key end

     0   :  { %s2201_s0 = inlined_call_operand.hbm [shape: f32[2,16,128], index: 0, kind: input, shape index: {}]   ;;  %s2202_s1 = inlined_call_operand.hbm [shape: f32[2,16,128], index: 1, kind: input, shape index: {}]   ;;  %s2203_s2 = inlined_call_operand.hbm [shape: f32[2,16,128], index: 2, kind: input, shape index: {}]   ;;  %s2204_s3 = inlined_call_operand.hbm [shape: bf16[128,256], index: 3, kind: input, shape index: {}]   ;;  %s2205_s4 = inlined_call_operand.vmem [shape: f32[1,256], index: 4, kind: input, shape index: {}]   ;;  %s2206_s5 = inlined_call_operand.hbm [shape: f32[9,128], index: 5, kind: input, shape index: {}]   ;;  %s2207_s6 = inlined_call_operand.vmem [shape: f32[1,128], index: 6, kind: input, shape index: {}]   ;;  %s2208_s7 = inlined_call_operand.hbm [shape: bf16[128,128], index: 7, kind: input, shape index: {}]   ;;  %s2209_s8 = inlined_call_operand.vmem [shape: f32[1,128], index: 8, kind: input, shape index: {}]   ;;  %s2210_s9 = inlined_call_operand.hbm [shape: f32[2,16,128], index: 9, kind: output, shape index: {}]  }
   0x1   :  { %2227 = sst [smem:[#allocation26_spill]] %s2202_s1 }
   0x2   :  { %2228 = sst [smem:[#allocation27_spill]] %s2204_s3 }
   0x3   :  { %2229 = sst [smem:[#allocation28_spill]] %s2206_s5 }
   0x4   :  { %2230 = sst [smem:[#allocation29_spill]] %s2209_s8 }
   0x5   :  { %2231 = sst [smem:[#allocation30_spill]] %s2210_s9 }
   0x6   :  { %14 = vsyncpa [#allocation3], 0 }
   0x7   :  { %16 = vsyncpa [#allocation3 + $0x1], 0 }
   0x8   :  { %17 = vsyncpa [#allocation6], 0 }
   0x9   :  { %19 = vsyncpa [#allocation6 + $0x1], 0 }
   0xa   :  { %20 = vsyncpa [#allocation9], 0 }
   0xb   :  { %21 = vsyncpa [#allocation12], 0 }
   0xc   :  { %22 = vsyncpa [#allocation4], 0 }
   0xd   :  { %24 = vsyncpa [#allocation4 + $0x1], 0  ;;  %s1838_s30 = smov 0   ;;  %s1840_s10 = smov 0  }
   0xe   :  { %s1842_s11 = smov 0   ;;  %s1844_s12 = smov 0  }
   0xf   :  { %s1846_s13 = smov 0   ;;  %s1848_s14 = smov 0  }
  0x10 LB: > { %2232 = sst [smem:[#allocation19_spill]] %s1750_s30  ;;  %s1869_s15 = sadd.s32 4294967295, %s1770_s14   ;;  %s1770_s14 = sphi %s1848_s14, %s30_s14   ;;  %s1766_s13 = sphi %s1846_s13, %s2271_s13   ;;  %s1762_s12 = sphi %s1844_s12, %s2270_s12   ;;  %s1758_s11 = sphi %s1842_s11, %s2274_s11   ;;  %s1754_s10 = sphi %s1840_s10, %s2273_s10   ;;  %s1750_s30 = sphi %s1838_s30, %s2272_s30  }
  0x11   : > { %2233 = sst [smem:[#allocation20_spill]] %s1758_s11  ;;  %s1252_s16 = sadd.s32 4294967294, %s1770_s14  }
  0x12   : > { %2234 = sst [smem:[#allocation21_spill]] %s1766_s13  ;;  %p66_p0 = scmp.ne.s32.totalorder %s1758_s11, %s1754_s10 }
  0x13   : > { %p67_p1 = scmp.eq.s32.totalorder %s1770_s14, 0  ;;  %p72_p2 = scmp.ne.s32.totalorder %s1754_s10, %s1750_s30 }
  0x14   : > { %p2211_p3 = scmp.eq.s32.totalorder %s1869_s15, 0  ;;  %p288_p5 = scmp.eq.s32.totalorder %s1869_s15, 1 }
  0x15   : > { %p1878_p4 = por %p67_p1, %p66_p0  ;;  %p294_p7 = scmp.eq.s32.totalorder %s1252_s16, 1 }
  0x16   : > { %p1885_p6 = por %p2211_p3, %p72_p2  ;;  %p1889_p8 = por %p288_p5, %p66_p0 }
  0x17   : > { %p1253_p9 = scmp.ge.s32.totalorder %s1770_s14, 1  ;;  %p1894_p10 = por %p294_p7, %p72_p2 }
  0x18   : > { %s2236_s18 = scalar_select %p1885_p6, 1, 0 }
  0x19   : > { %s2237_s19 = scalar_select %p1889_p8, 1, 0 }
  0x1a   : > { %s2239_s20 = scalar_select %p1894_p10, 1, 0 }
  0x1b   : > { %2238 = sst [smem:[#allocation22_spill]] %s2237_s19  ;;  %p301_p11 = scmp.lt.s32.totalorder %s1770_s14, 3 }
  0x1c   : > { %2240 = sst [smem:[#allocation23_spill]] %s2239_s20  ;;  %s1772_s22 = smov [#allocation8]  }
  0x1d   : > { %p1899_p12 = pnand %p1253_p9, %p301_p11  ;;  %s313_s23 = sshll.u32 %s1772_s22, 4  ;;  %s314_s23 = int_to_ptr.vmem [resolvable:$true] %s313_s23 }
  0x1e   : > { %s42_s25 = sadd.s32 1, %s1766_s13  ;;  %s59_s26 = sadd.s32 1, %s1758_s11 }
  0x1f   : > { %p1368_p13 = pneg %p1899_p12  ;;  %p1914_p2 = scmp.ge.s32.totalorder %s42_s25, 2 }
  0x20   : > { %s1527_s28 = scalar_lea.vmem %s314_s23, 2048 }
  0x21   : > { %p1908_p1 = pnand %p1368_p13, %p2211_p3  ;;  %p1528_p7 = scmp.ne.s32.totalorder %s314_s23, %s1527_s28 }
  0x22   : > { %p1535_p13 = scmp.lt.s32.totalorder %s314_s23, %s314_s23  ;;  %p1536_p0 = scmp.lt.s32.totalorder %s1527_s28, %s1527_s28 }
  0x23   : > { %p1518_p5 = pneg %p1908_p1 }
  0x24   : > { %p1537_p3 = por %p1536_p0, %p1535_p13 }
  0x25   : > { %p1530_p9 = pnand %p1528_p7, %p1518_p5 }
  0x27   : > { %p1531_p11 = pneg %p1530_p9 }
  0x29   : > { %p1538_p10 = pnand %p1537_p3, %p1531_p11 }
  0x2b   : > { %1541 = shalt.err (!%p1538_p10)
}
  0x2c   : > { %s2217_s29 = smov 128   ;;  %s2219_s16 = smov 8  }
  0x2d   : > { %s2244_s3 = sld [smem:[#allocation27_spill]]  ;;  %s2276_s25 = smov (%p1914_p2, %s42_s25), 0 }
  0x2e   : > { %2245 = sst [smem:[#allocation24_spill]] %s2276_s25  ;;  %p1395_p3 = scmp.lt.s32.totalorder %s1770_s14, 2 }
  0x2f   : > { %s1937_s20 = sand.u32 1, %s1758_s11   ;;  %s54_s30 = ssub.s32 %s1766_s13, %s2276_s25 }
  0x30   : > { %s1942_s9 = sshll.u32 %s1766_s13, 8  ;;  %p57_p10 = scmp.eq.s32.totalorder %s54_s30, 0 }
  0x31   : > { %p1946_p0 = pnand %p1395_p3, %p1878_p4  ;;  %s1261_s27 = sshll.u32 %s1937_s20, 4 }
  0x32   : > { %s1953_s22 = scalar_select %p57_p10, %s1758_s11, %s59_s26  }
  0x33   : > { %1371 = dma.hbm_to_vmem [thread:$0]  (!%p1908_p1), %s2244_s3, 2048, %s314_s23, [#allocation9], %s2217_s29, %s2217_s29, %s2219_s16  }
  0x34   : > { %s386_s23 = sand.u32 1, %s1770_s14   ;;  %2247 = sst [smem:[#allocation25_spill]] %s1953_s22 }
  0x35   : > { %s2248_s1 = sld [smem:[#allocation26_spill]]  ;;  %s390_s3 = scalar_lea.vmem [#allocation5], %s1261_s27 }
  0x36   : > { %s399_s25 = sshll.u32 %s390_s3, 4  ;;  %s1775_s13 = smov [#allocation10]   ;;  %s400_s25 = int_to_ptr.vmem [resolvable:$true] %s399_s25 }
  0x37   : > { %s329_s30 = sshll.u32 %s1775_s13, 4  ;;  %s1959_s17 = scalar_lea.sflag [#allocation6], %s386_s23  ;;  %s330_s30 = int_to_ptr.vmem [resolvable:$true] %s329_s30 }
  0x38   : > { %p2223_p4 = pneg %p1946_p0  ;;  %s1555_s8 = scalar_lea.vmem %s400_s25, 256 }
  0x39   : > { %p1556_p2 = scmp.ne.s32.totalorder %s400_s25, %s1555_s8  ;;  %s1776_s26 = smov [#allocation5]  }
  0x3a   : > { %s1560_s22 = sshll.u32 %s1776_s26, 4  ;;  %s1561_s22 = int_to_ptr.vmem [resolvable:$false] %s1560_s22 }
  0x3b   : > { %s398_s16 = scalar_lea.hbm %s2248_s1, %s1942_s9  ;;  %p1558_p7 = pnand %p1556_p2, %p2223_p4 }
  0x3c   : > { %s1562_s29 = scalar_lea.vmem %s1561_s22, 512  ;;  %p1563_p11 = scmp.lt.s32.totalorder %s400_s25, %s1561_s22 }
  0x3d   : > { %p1559_p9 = pneg %p1558_p7  ;;  %p1564_p13 = scmp.lt.s32.totalorder %s1562_s29, %s1555_s8 }
  0x3f   : > { %p1565_p3 = por %p1564_p13, %p1563_p11 }
  0x41   : > { %p1566_p10 = pnand %p1565_p3, %p1559_p9 }
  0x43   : > { %1569 = shalt.err (!%p1566_p10)
}
  0x44   : > { %s2249_s3 = smov 8   ;;  %s2250_s13 = smov 128  }
  0x45   : > { %1384 = dma.hbm_to_vmem [thread:$0]  (!%p1946_p0), %s398_s16, 256, %s400_s25, %s1959_s17, %s2250_s13, %s2250_s13, %s2249_s3  }
  0x46   : > { %s1581_s23 = scalar_lea.vmem %s330_s30, 256  ;;  %p1589_p8 = scmp.lt.s32.totalorder %s330_s30, %s330_s30 }
  0x47   : > { %p1582_p2 = scmp.ne.s32.totalorder %s330_s30, %s1581_s23  ;;  %p1590_p6 = scmp.lt.s32.totalorder %s1581_s23, %s1581_s23 }
  0x49   : > { %p1584_p7 = pnand %p1582_p2, %p1518_p5  ;;  %p1591_p11 = por %p1590_p6, %p1589_p8 }
  0x4b   : > { %p1585_p4 = pneg %p1584_p7 }
  0x4d   : > { %p1592_p9 = pnand %p1591_p11, %p1585_p4 }
  0x4f   : > { %1595 = shalt.err (!%p1592_p9)
}
  0x50   : > { %s2251_s5 = sld [smem:[#allocation28_spill]]  ;;  %s1777_s25 = smov [#allocation11]  }
  0x51   : > { %s345_s16 = sshll.u32 %s1777_s25, 4  ;;  %s346_s16 = int_to_ptr.vmem [resolvable:$true] %s345_s16 }
  0x52   : > { %s1607_s22 = scalar_lea.vmem %s346_s16, 1024  ;;  %p1615_p4 = scmp.lt.s32.totalorder %s346_s16, %s346_s16 }
  0x53   : > { %p1608_p13 = scmp.ne.s32.totalorder %s346_s16, %s1607_s22  ;;  %p1616_p3 = scmp.lt.s32.totalorder %s1607_s22, %s1607_s22 }
  0x55   : > { %p1610_p6 = pnand %p1608_p13, %p1518_p5  ;;  %p1617_p10 = por %p1616_p3, %p1615_p4 }
  0x56   : > { %1374 = dma.hbm_to_vmem [thread:$0]  (!%p1908_p1), %s2251_s5, 256, %s330_s30, [#allocation9], %s2250_s13, %s2250_s13, %s2249_s3  }
  0x57   : > { %p1611_p8 = pneg %p1610_p6 }
  0x59   : > { %p1618_p2 = pnand %p1617_p10, %p1611_p8 }
  0x5b   : > { %1621 = shalt.err (!%p1618_p2)
}
  0x5c   : > { %s1778_s28 = smov 64   ;;  %s1779_s30 = smov 4  }
  0x5d   : > { %1377 = dma.hbm_to_vmem [thread:$0]  (!%p1908_p1), %s2208_s7, 1024, %s346_s16, [#allocation12], %s1778_s28, %s1778_s28, %s1779_s30  }
  0x5e   : > { %s1258_s3 = sshll.u32 %s1937_s20, 3  ;;  %s377_s8 = scalar_lea.hbm %s2201_s0, %s1942_s9 }
  0x5f   : > { %s366_s27 = scalar_lea.vmem [#allocation2], %s1258_s3  ;;  %s1316_s22 = sadd.s32 128, %s1942_s9 }
  0x60   : > { %s379_s25 = sshll.u32 %s366_s27, 4  ;;  %s363_s1 = scalar_lea.sflag [#allocation3], %s1937_s20  ;;  %s380_s25 = int_to_ptr.vmem [resolvable:$true] %s379_s25 }
  0x61   : > { %s1635_s5 = scalar_lea.vmem %s380_s25, 128  ;;  %p2252_p7 = pneg %p1946_p0 }
  0x62   : > { %p1636_p5 = scmp.ne.s32.totalorder %s380_s25, %s1635_s5  ;;  %s1780_s24 = smov [#allocation2]  }
  0x63   : > { %s1640_s11 = sshll.u32 %s1780_s24, 4  ;;  %s1641_s11 = int_to_ptr.vmem [resolvable:$false] %s1640_s11 }
  0x64   : > { %p1638_p11 = pnand %p1636_p5, %p2252_p7  ;;  %s1642_s16 = scalar_lea.vmem %s1641_s11, 256 }
  0x65   : > { %p1643_p1 = scmp.lt.s32.totalorder %s380_s25, %s1641_s11  ;;  %p1644_p13 = scmp.lt.s32.totalorder %s1642_s16, %s1635_s5 }
  0x66   : > { %p1639_p9 = pneg %p1638_p11 }
  0x67   : > { %p1645_p6 = por %p1644_p13, %p1643_p1 }
  0x69   : > { %p1646_p8 = pnand %p1645_p6, %p1639_p9 }
  0x6b   : > { %1649 = shalt.err (!%p1646_p8)
}
  0x6c   : > { %1381 = dma.hbm_to_vmem [thread:$0]  (!%p1946_p0), %s377_s8, 128, %s380_s25, %s363_s1  }
  0x6d   : > { %s424_s28 = scalar_lea.hbm %s2203_s2, %s1316_s22  ;;  %s413_s30 = scalar_lea.vmem [#allocation7], %s1258_s3 }
  0x6e   : > { %s426_s26 = sshll.u32 %s413_s30, 4  ;;  %p2253_p3 = pmov %p2252_p7  ;;  %s427_s26 = int_to_ptr.vmem [resolvable:$true] %s426_s26 }
  0x6f   : > { %s1663_s29 = scalar_lea.vmem %s427_s26, 128  ;;  %s1781_s5 = smov [#allocation7]  }
  0x70   : > { %p1664_p4 = scmp.ne.s32.totalorder %s427_s26, %s1663_s29  ;;  %s1668_s11 = sshll.u32 %s1781_s5, 4  ;;  %s1669_s11 = int_to_ptr.vmem [resolvable:$false] %s1668_s11 }
  0x71   : > { %s1670_s13 = scalar_lea.vmem %s1669_s11, 256  ;;  %p1671_p5 = scmp.lt.s32.totalorder %s427_s26, %s1669_s11 }
  0x72   : > { %p1666_p10 = pnand %p1664_p4, %p2253_p3  ;;  %p1672_p7 = scmp.lt.s32.totalorder %s1670_s13, %s1663_s29 }
  0x74   : > { %p1667_p2 = pneg %p1666_p10  ;;  %p1673_p11 = por %p1672_p7, %p1671_p5 }
  0x76   : > { %p1674_p9 = pnand %p1673_p11, %p1667_p2 }
  0x78   : > { %1677 = shalt.err (!%p1674_p9)
}
  0x79   : > { %1387 = dma.hbm_to_vmem [thread:$0]  (!%p1946_p0), %s424_s28, 128, %s427_s26, %s1959_s17  }
  0x7a   : > { %435 = sbr.rel (%p1899_p12) target bundleno = 962 (0x3c2), region = 56  ;;  %s2015_s1 = sand.u32 (!%p1899_p12), 1, %s1754_s10  }
  0x7b   : > { %s1268_s3 = sshll.u32 (!%p1899_p12), %s2015_s1, 3  ;;  %s438_s23 = scalar_lea.sflag (!%p1899_p12), [#allocation3], %s2015_s1 }
  0x7c   : > { %s441_s8 = scalar_lea.vmem (!%p1899_p12), [#allocation2], %s1268_s3  ;;  %p2254_p1 = scmp.ne.s32.totalorder (!%p1899_p12), %s2236_s18, 0 }
  0x7f   : > { %1729 = dma.done.wait (%p2254_p1), %s438_s23, 128  }
  0x80   : > { %1731 = vsyncadd (%p2254_p1), %s438_s23, 4294967168  ;;  %s446_s19 = sand.u32 1, %s1869_s15   ;;  %s1269_s21 = sshll.u32 %s2015_s1, 4 }
  0x81   : > { %s447_s17 = scalar_lea.sflag [#allocation6], %s446_s19  ;;  %s450_s27 = scalar_lea.vmem [#allocation5], %s1269_s21 }
  0x82   : > { %1733 = dma.done.wait (%p2254_p1), %s447_s17, 384  }
  0x83   : > { %1735 = vsyncadd (%p2254_p1), %s447_s17, 4294966912  ;;  %s459_s25 = scalar_lea.vmem [#allocation7], %s1268_s3  ;;  %p2255_p12 = scmp.eq.s32.totalorder %s1869_s15, 0 }
  0x85   : > { %1737 = dma.done.wait (%p2255_p12), [#allocation9], 2304   ;;  %p2256_p0 = pmov %p2255_p12 }
  0x87   : > { %1739 = vsyncadd (%p2256_p0), [#allocation9], 4294964992  ;;  %p2257_p13 = pmov %p2256_p0 }
  0x88   : > { %p2258_p6 = pmov %p2256_p0 }
  0x89   : > { %1741 = dma.done.wait (%p2257_p13), [#allocation12], 1024  }
  0x8a   : > { %1743 = vsyncadd (%p2258_p6), [#allocation12], 4294966272  ;;  %v527_v0 = vld [vmem:[%s441_s8] sm:$0xff]  ;;  %v528_v2 = vld [vmem:[%s450_s27] sm:$0xff]  ;;  %v1782_v33 = vmov 0   ;;  %vm1784_vm0 = vmmov 0  }
  0x8b   : > { %v529_v1 = vld [vmem:[%s450_s27 + $0x8] sm:$0xff]  ;;  %531 = vadd.xlane.f32.xlu0 %v527_v0  ;;  %v530_v3 = vld [vmem:[%s459_s25] sm:$0xff]  ;;  %733 = vmatprep.mubr.bf16.mxu0 %v1782_v33  ;;  %s2259_s20 = sld [smem:[#allocation29_spill]]  ;;  %s515_s30 = scalar_lea.vmem [#allocation13], %s1269_s21 }
  0x8c   : > { %535 = vadd.xlane.f32.xlu1 %v529_v1  ;;  %v1460_v4 = vld [vmem:[#allocation8 + $0x74] ss:$8 sps:$4 sm:$0xff]   ;;  %v1462_v5 = vld [vmem:[#allocation8 + $0x70] ss:$8 sps:$4 sm:$0xff]   ;;  %v1463_v22 = vld [vmem:[#allocation8 + $0x64] ss:$8 sps:$4 sm:$0xff]  }
  0x8d   : > { %701 = vmatprep.subr.bf16.mxu0 %v1460_v4  ;;  %v1465_v23 = vld [vmem:[#allocation8 + $0x60] ss:$8 sps:$4 sm:$0xff]   ;;  %v1466_v24 = vld [vmem:[#allocation8 + $0x54] ss:$8 sps:$4 sm:$0xff]   ;;  %v1468_v25 = vld [vmem:[#allocation8 + $0x50] ss:$8 sps:$4 sm:$0xff]  }
  0x8e   : > { %702 = vmatpush1.bf16.msra.mxu0 %v1462_v5  ;;  %v1469_v26 = vld [vmem:[#allocation8 + $0x44] ss:$8 sps:$4 sm:$0xff]   ;;  %v1471_v27 = vld [vmem:[#allocation8 + $0x40] ss:$8 sps:$4 sm:$0xff]   ;;  %v1472_v28 = vld [vmem:[#allocation8 + $0x34] ss:$8 sps:$4 sm:$0xff]  }
  0x8f   : > { %533 = vadd.xlane.f32.xlu0 %v528_v2  ;;  %703 = vmatprep.subr.bf16.mxu0 %v1463_v22  ;;  %v1474_v29 = vld [vmem:[#allocation8 + $0x30] ss:$8 sps:$4 sm:$0xff]   ;;  %v1475_v30 = vld [vmem:[#allocation8 + $0x24] ss:$8 sps:$4 sm:$0xff]   ;;  %v1477_v31 = vld [vmem:[#allocation8 + $0x20] ss:$8 sps:$4 sm:$0xff]  }
  0x90   : > { %537 = vadd.xlane.f32.xlu1 %v530_v3  ;;  %v1478_v32 = vld [vmem:[#allocation8 + $0x14] ss:$8 sps:$4 sm:$0xff]   ;;  %v1480_v34 = vld [vmem:[#allocation8 + $0x10] ss:$8 sps:$4 sm:$0xff]   ;;  %v1481_v35 = vld [vmem:[#allocation8 + $0x4] ss:$8 sps:$4 sm:$0xff]  }
  0x91   : > { %v1483_v36 = vld [vmem:[#allocation8] ss:$8 sps:$4 sm:$0xff]   ;;  %s2260_s28 = sld [smem:[#allocation22_spill]]  ;;  %s1088_s26 = sshll.u32 %s515_s30, 4  ;;  %s2148_s26 = int_to_ptr.vmem [resolvable:$true] %s1088_s26 }
  0x92   : > { %704 = vmatpush1.bf16.msra.mxu0 %v1465_v23  ;;  %s1317_s29 = sshll.u32 %s1762_s12, 8  ;;  %s2261_s13 = sld [smem:[#allocation30_spill]] }
  0x93   : > { %705 = vmatprep.subr.bf16.mxu0 %v1466_v24  ;;  %s1073_s8 = scalar_lea.sflag [#allocation4], %s2015_s1  ;;  %s1678_s19 = scalar_lea.vmem %s2148_s26, 256 }
  0x94   : > { %p1679_p8 = scmp.ne.s32.totalorder %s2148_s26, %s1678_s19  ;;  %s1785_s12 = smov [#allocation13]  }
  0x95   : > { %s1682_s21 = sshll.u32 %s1785_s12, 4  ;;  %s1683_s21 = int_to_ptr.vmem [resolvable:$false] %s1682_s21 }
  0x96   : > { %706 = vmatpush1.bf16.msra.mxu0 %v1468_v25  ;;  %v609_v25 = vld [vmem:[%s2205_s4] sm:$0x3]  ;;  %s1684_s17 = scalar_lea.vmem %s1683_s21, 512  ;;  %p1685_p2 = scmp.lt.s32.totalorder %s2148_s26, %s1683_s21 }
  0x97   : > { %707 = vmatprep.subr.bf16.mxu0 %v1469_v26  ;;  %p2263_p4 = scmp.ne.s32.totalorder %s2260_s28, 0  ;;  %p1686_p5 = scmp.lt.s32.totalorder %s1684_s17, %s1678_s19 }
  0x98   : > { %s2262_s3 = smov %s2261_s13  ;;  %s2153_s23 = scalar_lea.hbm %s2261_s13, %s1317_s29 }
  0x99   : > { %p1680_p3 = pnand %p1679_p8, %p2263_p4  ;;  %p1687_p7 = por %p1686_p5, %p1685_p2 }
  0x9a   : > { %708 = vmatpush1.bf16.msra.mxu0 %v1471_v27 }
  0x9b   : > { %709 = vmatprep.subr.bf16.mxu0 %v1472_v28  ;;  %p1681_p10 = pneg %p1680_p3 }
  0x9d   : > { %p1688_p11 = pnand %p1687_p7, %p1681_p10 }
  0x9e   : > { %710 = vmatpush1.bf16.msra.mxu0 %v1474_v29 }
  0x9f   : > { %711 = vmatprep.subr.bf16.mxu0 %v1475_v30 }
  0xa2   : > { %712 = vmatpush1.bf16.msra.mxu0 %v1477_v31 }
  0xa3   : > { %713 = vmatprep.subr.bf16.mxu0 %v1478_v32 }
  0xa6   : > { %714 = vmatpush1.bf16.msra.mxu0 %v1480_v34 }
  0xa7   : > { %715 = vmatprep.subr.bf16.mxu0 %v1481_v35 }
  0xaa   : > { %716 = vmatpush1.bf16.msra.mxu0 %v1483_v36 }
 0x114   : > { %v532_v6 = vpop.xlane.xlu0 %531 }
 0x115   : > { %v536_v7 = vpop.xlane.xlu1 %535  ;;  %v539_v8 = vmul.f32 0.03125, %v532_v6 }
 0x116   : > { %v541_v9 = vmul.f32 0.03125, %v536_v7 }
 0x117   : > { %v2039_v10 = vsub.f32 %v527_v0, %v539_v8  ;;  %v559_v37 = vmul.f32 96.0, %v539_v8 }
 0x118   : > { %v2041_v11 = vsub.f32 %v529_v1, %v541_v9  ;;  %v534_v12 = vpop.xlane.xlu0 %533  ;;  %v561_v40 = vmul.f32 96.0, %v541_v9 }
 0x119   : > { %v538_v13 = vpop.xlane.xlu1 %537  ;;  %v540_v14 = vmul.f32 0.03125, %v534_v12  ;;  %v547_v15 = vmul.f32 %v2039_v10, %v2039_v10  ;;  %v563_v38 = vmul.f32 %v559_v37, %v539_v8 }
 0x11a   : > { %v542_v16 = vmul.f32 0.03125, %v538_v13  ;;  %v549_v17 = vmul.f32 %v2041_v11, %v2041_v11  ;;  %v565_v45 = vmul.f32 %v561_v40, %v541_v9  ;;  %v1783_v13 = vmov 0.0  }
 0x11b   : > { %551 = vadd.xlane.f32.xlu0 %v547_v15  ;;  %v2047_v18 = vsub.f32 %v528_v2, %v540_v14  ;;  %v560_v39 = vmul.f32 96.0, %v540_v14  ;;  %1328 = vmatprep.subr.bf16.mxu1 %v1783_v13  ;;  %v1486_v15 = vld [vmem:[#allocation11 + $0x28] sm:$0xff]  }
 0x11c   : > { %v2049_v19 = vsub.f32 %v530_v3, %v542_v16  ;;  %v562_v46 = vmul.f32 96.0, %v542_v16  ;;  %1344 = vmatprep.mubr.msk.bf16.mxu1 %vm1784_vm0, %v1783_v13 }
 0x11d   : > { %v548_v20 = vmul.f32 %v2047_v18, %v2047_v18  ;;  %v564_v44 = vmul.f32 %v560_v39, %v540_v14  ;;  %v1484_v14 = vld [vmem:[#allocation11 + $0x38] sm:$0xff]  }
 0x11e   : > { %v550_v21 = vmul.f32 %v2049_v19, %v2049_v19  ;;  %v566_v55 = vmul.f32 %v562_v46, %v542_v16  ;;  %1329 = vmatpush3.bf16.msra.mxu1 %v1484_v14  ;;  %v1488_v16 = vld [vmem:[#allocation11 + $0x18] sm:$0xff]  }
 0x11f   : > { %555 = vadd.xlane.f32.xlu0 %v549_v17  ;;  %553 = vadd.xlane.f32.xlu1 %v548_v20  ;;  %v1489_v17 = vld [vmem:[#allocation11 + $0x10] sm:$0xff]   ;;  %v611_v20 = vlaneseq }
 0x120   : > { %1330 = vmatprep.subr.bf16.mxu1 %v1783_v13 }
 0x123   : > { %557 = vadd.xlane.f32.xlu1 %v550_v21  ;;  %v2068_v21 = vshrl.u32 %v611_v20, 7 }
 0x125   : > { %v617_v22 = vsub.s32 1, %v2068_v21  ;;  %v862_v46 = vsub.s32 2, %v2068_v21  ;;  %vm829_vm1 = vcmp.lt.s32.totalorder %v2068_v21, 4  ;;  %vm843_vm2 = vcmp.lt.s32.totalorder %v2068_v21, 3 }
 0x126   : > { %vm857_vm3 = vcmp.lt.s32.totalorder %v2068_v21, 2  ;;  %vm871_vm4 = vcmp.lt.s32.totalorder %v2068_v21, 1  ;;  %vm885_vm5 = vcmp.lt.s32.totalorder %v2068_v21, 7  ;;  %vm899_vm6 = vcmp.lt.s32.totalorder %v2068_v21, 6 }
 0x127   : > { %v618_v26 = vrot.slane %v609_v25, %v617_v22  ;;  %vm913_vm7 = vcmp.lt.s32.totalorder %v2068_v21, 5 }
 0x1a4   : > { %v552_v41 = vpop.xlane.xlu0 %551 }
 0x1a5   : > { %v567_v42 = vsub.f32 %v552_v41, %v563_v38  ;;  %v613_v41 = vsub.s32 0, %v2068_v21 }
 0x1a7   : > { %v571_v43 = vmul.f32 0.03125, %v567_v42  ;;  %v822_v42 = vsub.s32 4, %v2068_v21 }
 0x1a8   : > { %v554_v47 = vpop.xlane.xlu1 %553  ;;  %v556_v48 = vpop.xlane.xlu0 %555 }
 0x1a9   : > { %v575_v49 = vmax.f32 %v571_v43, 0.0  ;;  %v568_v50 = vsub.f32 %v554_v47, %v564_v44  ;;  %v569_v51 = vsub.f32 %v556_v48, %v565_v45  ;;  %v614_v43 = vrot.slane %v609_v25, %v613_v41  ;;  %v2076_v44 = vld [vmem:[#allocation10] sm:$0xff] }
 0x1aa   : > { %v835_v45 = vrot.slane %v2076_v44, %v613_v41  ;;  %v823_v47 = vrot.slane %v2076_v44, %v822_v42  ;;  %v876_v48 = vsub.s32 3, %v2068_v21 }
 0x1ab   : > { %v579_v52 = vadd.f32 1e-05, %v575_v49  ;;  %v572_v53 = vmul.f32 0.03125, %v568_v50  ;;  %v573_v54 = vmul.f32 0.03125, %v569_v51  ;;  %v890_v49 = vsub.s32 5, %v2068_v21 }
 0x1ac   : > { %v558_v56 = vpop.xlane.xlu1 %557  ;;  %v2085_v51 = vrot.slane %v1783_v13, 4 }
 0x1ad   : > { %v576_v57 = vmax.f32 %v572_v53, 0.0  ;;  %v577_v58 = vmax.f32 %v573_v54, 0.0  ;;  %v570_v59 = vsub.f32 %v558_v56, %v566_v55  ;;  %1492 = vrsqrt.f32 %v579_v52 }
 0x1ae   : > { %v840_v52 = vrot.slane %v1783_v13, 5  ;;  %v854_v53 = vrot.slane %v1783_v13, 6  ;;  %v849_v55 = vrot.slane %v2076_v44, %v617_v22  ;;  %v868_v56 = vrot.slane %v1783_v13, 7 }
 0x1af   : > { %v580_v60 = vadd.f32 1e-05, %v576_v57  ;;  %v581_v61 = vadd.f32 1e-05, %v577_v58  ;;  %v574_v62 = vmul.f32 0.03125, %v570_v59  ;;  %v904_v57 = vsub.s32 6, %v2068_v21 }
 0x1b0   : > { %v863_v59 = vrot.slane %v2076_v44, %v862_v46 }
 0x1b1   : > { %1494 = vrsqrt.f32 %v580_v60  ;;  %v578_v63 = vmax.f32 %v574_v62, 0.0  ;;  %v877_v60 = vrot.slane %v2076_v44, %v876_v48  ;;  %v891_v62 = vrot.slane %v2076_v44, %v890_v49 }
 0x1b2   : > { %1496 = vrsqrt.f32 %v581_v61  ;;  %v884_v61 = vrot.slane %v1783_v13, 1 }
 0x1b3   : > { %v582_v0 = vadd.f32 1e-05, %v578_v63 }
 0x1b5   : > { %1498 = vrsqrt.f32 %v582_v0 }
 0x1ba   : > { %v1493_v1 = vpop.eup %1492 }
 0x1bb   : > { %v587_v3 = vmul.f32 %v1493_v1, %v2039_v10  ;;  %v1485_v10 = vld [vmem:[#allocation11 + $0x30] sm:$0xff]  }
 0x1bc   : > { %1331 = vmatpush3.bf16.msra.mxu1 %v1485_v10 }
 0x1bd   : > { %1332 = vmatprep.subr.bf16.mxu1 %v1783_v13 }
 0x1be   : > { %v1495_v2 = vpop.eup %1494 }
 0x1bf   : > { %v588_v4 = vmul.f32 %v1495_v2, %v2047_v18  ;;  %v1497_v5 = vpop.eup %1496  ;;  %v1490_v18 = vld [vmem:[#allocation11 + $0x8] sm:$0xff]  }
 0x1c0   : > { %v589_v8 = vmul.f32 %v1497_v5, %v2041_v11  ;;  %1333 = vmatpush3.bf16.msra.mxu1 %v1486_v15  ;;  %v1487_v11 = vld [vmem:[#allocation11 + $0x20] sm:$0xff]   ;;  %v898_v5 = vrot.slane %v1783_v13, 2  ;;  %v918_v15 = vsub.s32 7, %v2068_v21 }
 0x1c1   : > { %v591_v6 = vpack.c.bf16 %v588_v4, %v587_v3  ;;  %1334 = vmatprep.subr.bf16.mxu1 %v1783_v13 }
 0x1c2   : > { %v1499_v7 = vpop.eup %1498 }
 0x1c3   : > { %734 = vmatmul.mubr.bf16.vlgmr.msra.gmra.mxu0 %v591_v6  ;;  %v590_v9 = vmul.f32 %v1499_v7, %v2049_v19  ;;  %v1491_v19 = vld [vmem:[#allocation11] sm:$0xff]   ;;  %v905_v6 = vrot.slane %v2076_v44, %v904_v57  ;;  %v1295_v57 = vld [vmem:[#allocation10 + $0x8] ss:$0 sm:$0xff] }
 0x1c4   : > { %743 = vmatprep.mubr.bf16.mxu0 %v1782_v33  ;;  %1335 = vmatpush3.bf16.msra.mxu1 %v1487_v11 }
 0x1c5   : > { %v592_v12 = vpack.c.bf16 %v590_v9, %v589_v8  ;;  %1336 = vmatprep.subr.bf16.mxu1 %v1783_v13 }
 0x1c8   : > { %1337 = vmatpush3.bf16.msra.mxu1 %v1488_v16 }
 0x1c9   : > { %1338 = vmatprep.subr.bf16.mxu1 %v1783_v13 }
 0x1cb   : > { %744 = vmatmul.mubr.bf16.gmra.mxu0 %v592_v12 }
 0x1cc   : > { %1339 = vmatpush3.bf16.msra.mxu1 %v1489_v17 }
 0x1cd   : > { %1340 = vmatprep.subr.bf16.mxu1 %v1783_v13 }
 0x1d0   : > { %1341 = vmatpush3.bf16.msra.mxu1 %v1490_v18 }
 0x1d1   : > { %1342 = vmatprep.subr.bf16.mxu1 %v1783_v13 }
 0x1d4   : > { %1343 = vmatpush3.bf16.msra.mxu1 %v1491_v19 }
 0x283   : > { %v735_v23 = vpop.f32.mrf.mxu0 }
 0x285   : > { %v737_v24 = vpop.f32.mrf.mxu0 }
 0x287   : > { %v739_v27 = vpop.f32.mrf.mxu0 }
 0x288   : > { %v740_v50 = vadd.f32 %v739_v27, %v614_v43 }
 0x289   : > { %v741_v28 = vpop.f32.mrf.mxu0 }
 0x28a   : > { %v742_v29 = vadd.f32 %v741_v28, %v618_v26 }
 0x28b   : > { %v745_v30 = vpop.f32.mrf.mxu0 }
 0x28c   : > { %v1292_v31 = vmul.f32 -1.442695, %v742_v29  ;;  %v746_v2 = vadd.f32 %v745_v30, %v614_v43  ;;  %v919_v43 = vrot.slane %v2076_v44, %v918_v15 }
 0x28d   : > { %v747_v32 = vpop.f32.mrf.mxu0 }
 0x28e   : > { %1500 = vpow2.f32 %v1292_v31  ;;  %v748_v33 = vadd.f32 %v747_v32, %v618_v26 }
 0x28f   : > { %v749_v34 = vpop.f32.mrf.mxu0 }
 0x290   : > { %v1293_v35 = vmul.f32 -1.442695, %v748_v33 }
 0x291   : > { %v751_v36 = vpop.f32.mrf.mxu0 }
 0x292   : > { %1502 = vpow2.f32 %v1293_v35 }
 0x29b   : > { %v1501_v37 = vpop.eup %1500 }
 0x29c   : > { %v767_v38 = vadd.f32 1.0, %v1501_v37 }
 0x29e   : > { %1504 = vrcp.f32 %v767_v38 }
 0x29f   : > { %v1503_v39 = vpop.eup %1502 }
 0x2a0   : > { %v768_v40 = vadd.f32 1.0, %v1503_v39 }
 0x2a2   : > { %1506 = vrcp.f32 %v768_v40 }
 0x2ab   : > { %v1505_v54 = vpop.eup %1504 }
 0x2ac   : > { %v779_v58 = vmul.f32 %v1505_v54, %v740_v50  ;;  %v912_v50 = vrot.slane %v1783_v13, 3 }
 0x2ae   : > { %v827_v63 = vrot.slane %v779_v58, 4  ;;  %v841_v0 = vrot.slane %v779_v58, 5  ;;  %v855_v1 = vrot.slane %v779_v58, 6  ;;  %v869_v4 = vrot.slane %v779_v58, 7 }
 0x2af   : > { %v1507_v3 = vpop.eup %1506  ;;  %v824_v12 = vmul.f32 %v823_v47, %v779_v58  ;;  %v882_v10 = vrot.slane %v779_v58, 1  ;;  %v896_v34 = vrot.slane %v779_v58, 2  ;;  %v910_v42 = vrot.slane %v779_v58, 3 }
 0x2b0   : > { %v831_v7 = vsel %vm829_vm1, %v2085_v51, %v827_v63  ;;  %v845_v8 = vsel %vm843_vm2, %v840_v52, %v841_v0  ;;  %v780_v9 = vmul.f32 %v1507_v3, %v746_v2  ;;  %v859_v16 = vsel %vm857_vm3, %v854_v53, %v855_v1 }
 0x2b1   : > { %v836_v14 = vmul.f32 %v835_v45, %v831_v7  ;;  %v850_v11 = vmul.f32 %v849_v55, %v845_v8  ;;  %v873_v20 = vsel %vm871_vm4, %v868_v56, %v869_v4  ;;  %v864_v29 = vmul.f32 %v863_v59, %v859_v16 }
 0x2b2   : > { %v828_v17 = vrot.slane %v780_v9, 4  ;;  %v842_v18 = vrot.slane %v780_v9, 5  ;;  %v856_v22 = vrot.slane %v780_v9, 6  ;;  %v883_v23 = vrot.slane %v780_v9, 1 }
 0x2b3   : > { %v838_v19 = vadd.f32 %v836_v14, %v824_v12  ;;  %v870_v26 = vrot.slane %v780_v9, 7  ;;  %v897_v27 = vrot.slane %v780_v9, 2  ;;  %v825_v30 = vmul.f32 %v823_v47, %v780_v9 }
 0x2b4   : > { %v830_v24 = vsel %vm829_vm1, %v827_v63, %v828_v17  ;;  %v844_v25 = vsel %vm843_vm2, %v841_v0, %v842_v18  ;;  %v858_v32 = vsel %vm857_vm3, %v855_v1, %v856_v22  ;;  %v887_v33 = vsel %vm885_vm5, %v882_v10, %v883_v23 }
 0x2b5   : > { %v852_v28 = vadd.f32 %v850_v11, %v838_v19  ;;  %v837_v31 = vmul.f32 %v835_v45, %v830_v24  ;;  %v911_v35 = vrot.slane %v780_v9, 3  ;;  %v878_v37 = vmul.f32 %v877_v60, %v873_v20 }
 0x2b6   : > { %v851_v39 = vmul.f32 %v849_v55, %v844_v25  ;;  %v872_v40 = vsel %vm871_vm4, %v869_v4, %v870_v26  ;;  %v901_v41 = vsel %vm899_vm6, %v896_v34, %v897_v27  ;;  %v865_v47 = vmul.f32 %v863_v59, %v858_v32  ;;  %v1296_v4 = vld [vmem:[%s2207_s6] ss:$0 sm:$0xff] }
 0x2b7   : > { %v866_v36 = vadd.f32 %v864_v29, %v852_v28  ;;  %v839_v38 = vadd.f32 %v837_v31, %v825_v30  ;;  %v892_v48 = vmul.f32 %v891_v62, %v887_v33  ;;  %v886_v49 = vsel %vm885_vm5, %v883_v23, %v884_v61  ;;  %v1299_v23 = vld [vmem:[%s2259_s20] ss:$0 sm:$0xff] }
 0x2b8   : > { %v915_v52 = vsel %vm913_vm7, %v910_v42, %v911_v35  ;;  %v879_v54 = vmul.f32 %v877_v60, %v872_v40  ;;  %v906_v56 = vmul.f32 %v905_v6, %v901_v41  ;;  %v900_v44 = vsel %vm899_vm6, %v897_v27, %v898_v5 }
 0x2b9   : > { %v880_v45 = vadd.f32 %v878_v37, %v866_v36  ;;  %v853_v46 = vadd.f32 %v851_v39, %v839_v38  ;;  %v893_v63 = vmul.f32 %v891_v62, %v886_v49  ;;  %v920_v0 = vmul.f32 %v919_v43, %v915_v52 }
 0x2ba   : > { %v914_v61 = vsel %vm913_vm7, %v911_v35, %v912_v50  ;;  %v907_v13 = vmul.f32 %v905_v6, %v900_v44  ;;  %v930_v3 = vmul.f32 %v1295_v57, %v830_v24  ;;  %v925_v60 = vsel %vm829_vm1, %v828_v17, %v2085_v51 }
 0x2bb   : > { %v867_v53 = vadd.f32 %v865_v47, %v853_v46  ;;  %v894_v55 = vadd.f32 %v892_v48, %v880_v45  ;;  %v921_v7 = vmul.f32 %v919_v43, %v914_v61  ;;  %v931_v9 = vmul.f32 %v1295_v57, %v925_v60 }
 0x2bd   : > { %v881_v58 = vadd.f32 %v879_v54, %v867_v53  ;;  %v908_v59 = vadd.f32 %v906_v56, %v894_v55 }
 0x2bf   : > { %v895_v1 = vadd.f32 %v893_v63, %v881_v58  ;;  %v922_v2 = vadd.f32 %v920_v0, %v908_v59 }
 0x2c1   : > { %v909_v5 = vadd.f32 %v907_v13, %v895_v1  ;;  %v932_v62 = vadd.f32 %v930_v3, %v922_v2 }
 0x2c3   : > { %v923_v8 = vadd.f32 %v921_v7, %v909_v5  ;;  %v941_v12 = vadd.f32 %v1296_v4, %v932_v62 }
 0x2c5   : > { %v933_v14 = vadd.f32 %v931_v9, %v923_v8  ;;  %v1297_v10 = vmul.f32 -1.442695, %v941_v12 }
 0x2c7   : > { %v942_v15 = vadd.f32 %v1296_v4, %v933_v14  ;;  %1508 = vpow2.f32 %v1297_v10 }
 0x2c9   : > { %v1298_v6 = vmul.f32 -1.442695, %v942_v15 }
 0x2cb   : > { %1510 = vpow2.f32 %v1298_v6 }
 0x2d4   : > { %v1509_v11 = vpop.eup %1508 }
 0x2d5   : > { %v949_v21 = vadd.f32 1.0, %v1509_v11 }
 0x2d7   : > { %1512 = vrcp.f32 %v949_v21 }
 0x2d8   : > { %v1511_v51 = vpop.eup %1510 }
 0x2d9   : > { %v950_v16 = vadd.f32 1.0, %v1511_v51 }
 0x2db   : > { %1514 = vrcp.f32 %v950_v16 }
 0x2e4   : > { %v1513_v17 = vpop.eup %1512 }
 0x2e5   : > { %v955_v19 = vmul.f32 %v1513_v17, %v941_v12 }
 0x2e8   : > { %v1515_v18 = vpop.eup %1514 }
 0x2e9   : > { %v956_v20 = vmul.f32 %v1515_v18, %v942_v15 }
 0x2eb   : > { %v957_v22 = vpack.c.bf16 %v956_v20, %v955_v19 }
 0x2ed   : > { %1345 = vmatmul.mubr.bf16.vlgmr.msra.gmra.mxu1 %v957_v22 }
 0x3ad   : > { %v1063_v24 = vpop.f32.mrf.mxu1 }
 0x3ae   : > { %v1064_v25 = vadd.f32 %v1299_v23, %v1063_v24 }
 0x3af   : > { %v1346_v26 = vpop.f32.mrf.mxu1 }
 0x3b0   : > { %1070 = vst [vmem:[%s515_s30] sm:$0xff] %v1064_v25 }
 0x3b1   : > { %v1066_v27 = vpop.f32.mrf.mxu1 }
 0x3b2   : > { %v1067_v28 = vadd.f32 %v1299_v23, %v1066_v27 }
 0x3b3   : > { %v1347_v29 = vpop.f32.mrf.mxu1 }
 0x3b4   : > { %1071 = vst [vmem:[%s515_s30 + $0x8] sm:$0xff] %v1067_v28 }
 0x3b5   : > { %1691 = shalt.err (!%p1688_p11)
}
 0x3b6   : > { %s1692_s27 = scalar_lea.hbm %s2153_s23, 256  ;;  %s1696_s18 = scalar_lea.hbm %s2262_s3, 512 }
 0x3b7   : > { %p1693_p9 = scmp.ne.s32.totalorder %s2153_s23, %s1692_s27  ;;  %p1697_p0 = scmp.lt.s32.totalorder %s2153_s23, %s2262_s3 }
 0x3b8   : > { %p1698_p13 = scmp.lt.s32.totalorder %s1696_s18, %s1692_s27 }
 0x3b9   : > { %p1694_p1 = pnand %p1693_p9, %p2263_p4 }
 0x3ba   : > { %p1699_p6 = por %p1698_p13, %p1697_p0 }
 0x3bb   : > { %p1695_p12 = pneg %p1694_p1 }
 0x3bd   : > { %p1700_p8 = pnand %p1699_p6, %p1695_p12 }
 0x3bf   : > { %1703 = shalt.err (!%p1700_p8)
}
 0x3c0   : > { %s1786_s16 = smov 128   ;;  %s1787_s9 = smov 8  }
 0x3c1   : > { %1366 = dma.vmem_to_hbm [thread:$0]  (%p2263_p4), %s2148_s26, 256, %s2153_s23, %s1073_s8, %s1786_s16, %s1786_s16, %s1787_s9  }
 0x3c2 PF: > { %s2264_s20 = sld [smem:[#allocation19_spill]]  ;;  %p2267_p10 = scmp.ge.s32.totalorder %s1770_s14, 2 }
 0x3c3   : > { %s2265_s30 = sld [smem:[#allocation23_spill]] }
 0x3c8   : > { %s1103_s29 = sand.u32 1, %s2264_s20  }
 0x3c9   : > { %p2266_p3 = scmp.ne.s32.totalorder %s2265_s30, 0  ;;  %s1104_s5 = scalar_lea.sflag [#allocation4], %s1103_s29 }
 0x3cb   : > { %p1389_p2 = pnand %p2267_p10, %p2266_p3 }
 0x3cd   : > { %p1390_p5 = pneg %p1389_p2 }
 0x3cf   : > { %1745 = dma.done.wait (%p1390_p5), %s1104_s5, 256  }
 0x3d0   : > { %1747 = vsyncadd (%p1390_p5), %s1104_s5, 4294967040  ;;  %s30_s14 = sadd.s32 1, %s1770_s14   ;;  %s2268_s11 = sld [smem:[#allocation20_spill]] }
 0x3d1   : > { %p27_p7 = scmp.ge.s32.totalorder %s30_s14, 4   ;;  %s2269_s28 = sld [smem:[#allocation25_spill]] }
 0x3d2   : > { %s2270_s12 = sld [smem:[#allocation21_spill]]  ;;  %s2272_s30 = smov %s1754_s10 }
 0x3d3   : > { %s2271_s13 = sld [smem:[#allocation24_spill]]  ;;  %29 = sbr.rel (!%p27_p7) target bundleno = 16 (0x10), region = 137 }
 0x3d6   : > { %s2273_s10 = smov %s2268_s11 }
 0x3d7   : > { %s2274_s11 = smov %s2269_s28 }
 0x3d8   :  { %1109 = vsyncpa [#allocation3], 1 }
 0x3d9   :  { %1111 = vsyncpa [#allocation3 + $0x1], 1 }
 0x3da   :  { %1112 = vsyncpa [#allocation6], 1 }
 0x3db   :  { %1114 = vsyncpa [#allocation6 + $0x1], 1 }
 0x3dc   :  { %1115 = vsyncpa [#allocation9], 1 }
 0x3dd   :  { %1116 = vsyncpa [#allocation12], 1 }
 0x3de   :  { %1117 = vsyncpa [#allocation4], 1 }
 0x3df   :  { %1119 = vsyncpa [#allocation4 + $0x1], 1 }

</bundles_post_ra>
